<compile_context>
chip_gen: v6e
topology: v6e:2x2x1
jax: 0.10.0
libtpu: 0.0.40
codegen_flags: <defaults>
</compile_context>

<pallas_src>
import functools
import math

import jax
import jax.numpy as jnp
from jax.experimental import pallas as pl
from jax.experimental.pallas import tpu as pltpu

_LANE = 128
_SUBLANE = 8
_TILE_CAP = 1024                      # (#4) sweep {512, 1024}; 1024 quarters step count
_BLOCK_BUDGET = 4 * 1024 * 1024       # target padded (in + out) VMEM bytes per grid step
_VMEM_LIMIT = 32 * 1024 * 1024        # worst-case live ~17 MiB double-buffered -> headroom


def _round_up(x, m):
    return (x + m - 1) // m * m


def _lcm(a, b):
    return a * b // math.gcd(a, b)


def _padded_bytes(shape, itemsize):
    """Approx VMEM footprint of a block: lane dim padded to 128, sublane dim to 8."""
    s = list(shape)
    if len(s) >= 1:
        s[-1] = _round_up(s[-1], _LANE)
    if len(s) >= 2:
        s[-2] = _round_up(s[-2], _SUBLANE)
    return math.prod(s) * itemsize


def _pick_tile(dim, cap=_TILE_CAP):
    """(#7) Full axis if it fits, else the largest multiple-of-128 divisor <= cap
    (keeps every block dense), else `cap` with a masked ragged trailing block."""
    if dim <= cap:
        return dim
    for t in range(cap - cap % _LANE, 0, -_LANE):
        if dim % t == 0:
            return t
    return cap


def _pick_batch_block(batch, per_batch_bytes):
    """(#3) Fold as many batch rows per grid step as the byte budget allows
    (prefer a divisor of `batch` so every block is full)."""
    cap = max(1, _BLOCK_BUDGET // max(per_batch_bytes, 1))
    if cap >= batch:
        return batch
    for bb in range(min(cap, batch), 0, -1):
        if batch % bb == 0:
            return bb
    return 1


def _fold_factor(d):
    """Smallest s such that s * d is a multiple of 128 (the lane width)."""
    return _LANE // math.gcd(d, _LANE)


def _merge_adjacent_axes(shape, dims):
    """Group input axes that stay adjacent & in-order under `dims`.

    Returns (merged_in_shape, merged_dims) such that
        jnp.transpose(x.reshape(merged_in_shape), merged_dims)
    equals jnp.transpose(x, dims) up to zero-cost reshapes.
    """
    groups = []  # runs of consecutive input axes, listed in *output* order
    for d in dims:
        if groups and d == groups[-1][-1] + 1:
            groups[-1].append(d)
        else:
            groups.append([d])
    order = sorted(range(len(groups)), key=lambda g: groups[g][0])
    merged_in_shape = []
    group_to_axis = {}
    for axis, g in enumerate(order):
        group_to_axis[g] = axis
        merged_in_shape.append(math.prod(shape[a] for a in groups[g]))
    merged_dims = tuple(group_to_axis[g] for g in range(len(groups)))
    return tuple(merged_in_shape), merged_dims


# --------------------------------------------------------------------------- #
# Path A: generic batched transpose (B, M, N) -> (B, N, M)
# --------------------------------------------------------------------------- #

def _swap_last_two_kernel(x_ref, o_ref):
    # jnp.swapaxes, not `.T` -- `.T` on the 3-D (bb, tm, tn) tile would also
    # reverse the folded batch axis (review correctness concern).
    o_ref[...] = jnp.swapaxes(x_ref[...], -1, -2)


def _batched_transpose(x3):
    B, M, N = x3.shape
    isz = x3.dtype.itemsize
    cap = _TILE_CAP if isz <= 4 else 512
    tm = _pick_tile(M, cap)
    tn = _pick_tile(N, cap)
    per_batch = _padded_bytes((1, tm, tn), isz) + _padded_bytes((1, tn, tm), isz)
    bb = _pick_batch_block(B, per_batch)
    grid = (B // bb, pl.cdiv(N, tn), pl.cdiv(M, tm))
    return pl.pallas_call(
        _swap_last_two_kernel,
        out_shape=jax.ShapeDtypeStruct((B, N, M), x3.dtype),
        grid_spec=pltpu.PrefetchScalarGridSpec(
            num_scalar_prefetch=0,
            grid=grid,
            in_specs=[pl.BlockSpec((bb, tm, tn), lambda b, j, i: (b, i, j))],
            out_specs=pl.BlockSpec((bb, tn, tm), lambda b, j, i: (b, j, i)),
        ),
        compiler_params=pltpu.CompilerParams(
            # (#5) no accumulator / cross-step carry: all axes independent.
            dimension_semantics=("parallel", "parallel", "parallel"),
            vmem_limit_bytes=_VMEM_LIMIT,
        ),
    )(x3)


# --------------------------------------------------------------------------- #
# Path B: small inner output dim (M < 128) -> lane-dense output stores  (#1)
# --------------------------------------------------------------------------- #

def _fold_out_kernel(x_ref, o_ref):
    # x: (bb, M, tn) -> transpose -> (bb, tn, M) -> emit lane-dense (bb, tn//s, s*M).
    xt = jnp.swapaxes(x_ref[...], -1, -2)
    o_ref[...] = xt.reshape(o_ref.shape)


def _small_m_transpose(x3, s):
    """(B, M, N) -> (B, N, M) for M < 128; output written as (B, N//s, s*M)."""
    B, M, N = x3.shape
    isz = x3.dtype.itemsize
    sm = s * M                                  # folded lane width (multiple of 128)
    q_total = N // s
    # Non-full N tiles must keep the folded sublane dim a multiple of 32 (covers
    # f32 / bf16 / int8 packed tilings) and the input lane dim a multiple of 128.
    gran = _lcm(32 * s, _LANE)

    def slab_bytes(tn):
        return (_padded_bytes((1, M, tn), isz)
                + _padded_bytes((1, max(tn // s, 1), sm), isz))

    if slab_bytes(N) <= _BLOCK_BUDGET or N <= gran:
        tn = N
    else:
        tn = max(gran, (_BLOCK_BUDGET * N // slab_bytes(N)) // gran * gran)
        tn = min(tn, N)
    bb = _pick_batch_block(B, slab_bytes(tn))
    grid = (B // bb, pl.cdiv(N, tn))
    folded = pl.pallas_call(
        _fold_out_kernel,
        out_shape=jax.ShapeDtypeStruct((B, q_total, sm), x3.dtype),
        grid_spec=pltpu.PrefetchScalarGridSpec(
            num_scalar_prefetch=0,
            grid=grid,
            in_specs=[pl.BlockSpec((bb, M, tn), lambda b, j: (b, 0, j))],
            out_specs=pl.BlockSpec((bb, tn // s, sm), lambda b, j: (b, j, 0)),
        ),
        compiler_params=pltpu.CompilerParams(
            dimension_semantics=("parallel", "parallel"),
            vmem_limit_bytes=_VMEM_LIMIT,
        ),
    )(x3)
    return folded.reshape(B, N, M)              # free (contiguous) reshape


# --------------------------------------------------------------------------- #
# Path B2: small inner input dim (N < 128) -> lane-dense input loads  (#2)
# --------------------------------------------------------------------------- #

def _fold_in_kernel(x_ref, o_ref):
    # x: (bb, tm//s, s*N) lane-dense -> view as (bb, tm, N) -> transpose -> (bb, N, tm).
    bb, q, sn = x_ref.shape
    n = o_ref.shape[1]
    x = x_ref[...].reshape(bb, q * (sn // n), n)
    o_ref[...] = jnp.swapaxes(x, -1, -2)


def _small_n_transpose(x3, s):
    """(B, M, N) -> (B, N, M) for N < 128; input read as (B, M//s, s*N)."""
    B, M, N = x3.shape
    isz = x3.dtype.itemsize
    sn = s * N
    xf = x3.reshape(B, M // s, sn)              # free (contiguous) reshape
    gran = _lcm(32 * s, _LANE)

    def slab_bytes(tm):
        return (_padded_bytes((1, max(tm // s, 1), sn), isz)
                + _padded_bytes((1, N, tm), isz))

    if slab_bytes(M) <= _BLOCK_BUDGET or M <= gran:
        tm = M
    else:
        tm = max(gran, (_BLOCK_BUDGET * M // slab_bytes(M)) // gran * gran)
        tm = min(tm, M)
    bb = _pick_batch_block(B, slab_bytes(tm))
    grid = (B // bb, pl.cdiv(M, tm))
    return pl.pallas_call(
        _fold_in_kernel,
        out_shape=jax.ShapeDtypeStruct((B, N, M), x3.dtype),
        grid_spec=pltpu.PrefetchScalarGridSpec(
            num_scalar_prefetch=0,
            grid=grid,
            in_specs=[pl.BlockSpec((bb, tm // s, sn), lambda b, i: (b, i, 0))],
            out_specs=pl.BlockSpec((bb, N, tm), lambda b, i: (b, 0, i)),
        ),
        compiler_params=pltpu.CompilerParams(
            dimension_semantics=("parallel", "parallel"),
            vmem_limit_bytes=_VMEM_LIMIT,
        ),
    )(xf)


# --------------------------------------------------------------------------- #
# One-time capability probes for the lane-dense relayout paths.
# The in-kernel sublane<->lane reshape is the only Mosaic-risky op in this file,
# so we compile+check a tiny instance once per (dim, s, dtype) and fall back to
# the generic masked path if the chip/compiler rejects it.
# --------------------------------------------------------------------------- #

def _probe_input(m, n, dtype_name):
    dtype = jnp.dtype(dtype_name)
    if jnp.issubdtype(dtype, jnp.floating):
        x = jax.random.normal(jax.random.PRNGKey(0), (2, m, n), jnp.float32)
        return x.astype(dtype)
    return (jnp.arange(2 * m * n, dtype=jnp.int32) % 113).astype(dtype).reshape(2, m, n)


@functools.lru_cache(maxsize=None)
def _small_m_path_ok(m, s, dtype_name):
    try:
        x = _probe_input(m, 8 * s, dtype_name)
        y = _small_m_transpose(x, s)
        return bool(jnp.array_equal(y, jnp.swapaxes(x, -1, -2)))
    except Exception:       # lowering / compile failure -> use the generic path
        return False


@functools.lru_cache(maxsize=None)
def _small_n_path_ok(n, s, dtype_name):
    try:
        x = _probe_input(8 * s, n, dtype_name)
        y = _small_n_transpose(x, s)
        return bool(jnp.array_equal(y, jnp.swapaxes(x, -1, -2)))
    except Exception:
        return False


# --------------------------------------------------------------------------- #
# Public entry point
# --------------------------------------------------------------------------- #

def permute_pallas(x, dims):
    """Pallas equivalent of torch.permute(x, dims)."""
    nd = x.ndim
    dims = tuple(int(d) % nd for d in dims)
    assert sorted(dims) == list(range(nd)), "dims must be a permutation of the axes"
    out_shape = tuple(x.shape[d] for d in dims)

    merged_in_shape, merged_dims = _merge_adjacent_axes(x.shape, dims)
    n = len(merged_dims)

    # Identity permutation (after merging): a pure view, nothing to move.
    if n <= 1 or merged_dims == tuple(range(n)):
        return x.reshape(out_shape)

    # Fast path: identity prefix + swap of the last two merged axes
    # (covers (0,2,3,1), (0,3,1,2), plain 2-D transposes, ...).
    if merged_dims == tuple(range(n - 2)) + (n - 1, n - 2):
        lead = merged_in_shape[: n - 2]
        B = math.prod(lead) if lead else 1
        M, N = merged_in_shape[n - 2], merged_in_shape[n - 1]
        if M == 1 or N == 1:
            return x.reshape(out_shape)          # degenerate transpose == reshape
        x3 = x.reshape(B, M, N)
        dt = str(x.dtype)
        if M < _LANE:                            # (#1) NCHW->NHWC-style: tiny output lane dim
            s = _fold_factor(M)
            if N % s == 0 and _small_m_path_ok(M, s, dt):
                return _small_m_transpose(x3, s).reshape(out_shape)
        if N < _LANE:                            # (#2) NHWC->NCHW-style: tiny input lane dim
            s = _fold_factor(N)
            if M % s == 0 and _small_n_path_ok(N, s, dt):
                return _small_n_transpose(x3, s).reshape(out_shape)
        return _batched_transpose(x3).reshape(out_shape)

    # TODO(synk): permutations that are not a (batched) two-axis swap after axis
    # merging (e.g. 3-axis rotations like (0,3,2,1)) fall back to XLA's transpose.
    return jnp.transpose(x, dims)


if __name__ == "__main__":
    cases = [
        ((2, 4, 16, 16), (0, 2, 3, 1), jnp.float32),    # module example: NCHW->NHWC, C=4
        ((2, 8, 32, 32), (0, 2, 3, 1), jnp.float32),    # larger spatial, lane-dense out path
        ((2, 16, 16, 4), (0, 3, 1, 2), jnp.float32),    # NHWC->NCHW, lane-dense in path
        ((2, 8, 16, 16), (0, 2, 3, 1), jnp.bfloat16),   # sub-32-bit dtype
        ((1088, 384),    (1, 0),       jnp.float32),    # ragged/masked trailing tile (review concern)
        ((2, 3, 4, 5),   (0, 3, 2, 1), jnp.float32),    # non-swap permutation -> XLA fallback
    ]
    key = jax.random.PRNGKey(0)
    for shape, dims, dtype in cases:
        key, sub = jax.random.split(key)
        x = jax.random.normal(sub, shape, jnp.float32).astype(dtype)
        out = jax.block_until_ready(permute_pallas(x, dims))
        ref = jnp.transpose(x, dims)
        assert out.shape == ref.shape, (shape, dims, out.shape, ref.shape)
        assert out.dtype == ref.dtype, (shape, dims, out.dtype, ref.dtype)
        assert bool(jnp.array_equal(out, ref)), (shape, dims)
    print("KERNEL_OK")
</pallas_src>

<mosaic_0001>
module attributes {stable_mosaic.version = 11 : i64} {
  func.func @_fold_out_kernel(%arg0: i32, %arg1: i32, %arg2: memref<2x4x256xf32, #tpu.memory_space<vmem>>, %arg3: memref<2x8x128xf32, #tpu.memory_space<vmem>>) attributes {dimension_semantics = [#tpu.dimension_semantics<parallel>, #tpu.dimension_semantics<parallel>], iteration_bounds = array<i64: 1, 1>, scalar_prefetch = 0 : i64, scratch_operands = 0 : i64, tpu.core_type = #tpu.core_type<tc>, window_params = [{transform_indices = @transform_0, window_bounds = array<i64: 2, 4, 256>}, {transform_indices = @transform_1, window_bounds = array<i64: 2, 8, 128>}]} {
    %c0 = arith.constant 0 : index
    %c0_0 = arith.constant 0 : index
    %c0_1 = arith.constant 0 : index
    %0 = vector.load %arg2[%c0, %c0_0, %c0_1] : memref<2x4x256xf32, #tpu.memory_space<vmem>>, vector<2x4x256xf32>
    %1 = tpu.transpose %0, [0, 2, 1] : vector<2x4x256xf32> -> vector<2x256x4xf32>
    %2 = vector.shape_cast %1 : vector<2x256x4xf32> to vector<2x8x128xf32>
    %c0_2 = arith.constant 0 : index
    %c0_3 = arith.constant 0 : index
    %c0_4 = arith.constant 0 : index
    %3 = vector.load %arg3[%c0_2, %c0_3, %c0_4] : memref<2x8x128xf32, #tpu.memory_space<vmem>>, vector<2x8x128xf32>
    tpu.vector_store %arg3[%c0_2, %c0_3, %c0_4], %2 {strides = array<i32>} : memref<2x8x128xf32, #tpu.memory_space<vmem>>, vector<2x8x128xf32>,
    return
  }
  func.func @transform_0(%arg0: i32, %arg1: i32) -> (i32, i32, i32) {
    %c0_i32 = arith.constant 0 : i32
    %c0_i32_0 = arith.constant 0 : i32
    return %arg0, %c0_i32, %arg1 : i32, i32, i32
  }
  func.func @transform_1(%arg0: i32, %arg1: i32) -> (i32, i32, i32) {
    %c0_i32 = arith.constant 0 : i32
    %c0_i32_0 = arith.constant 0 : i32
    return %arg0, %arg1, %c0_i32 : i32, i32, i32
  }
}

module attributes {stable_mosaic.version = 11 : i64} {
  func.func @_swap_last_two_kernel(%arg0: i32, %arg1: i32, %arg2: i32, %arg3: memref<2x4x256xf32, #tpu.memory_space<vmem>>, %arg4: memref<2x256x4xf32, #tpu.memory_space<vmem>>) attributes {dimension_semantics = [#tpu.dimension_semantics<parallel>, #tpu.dimension_semantics<parallel>, #tpu.dimension_semantics<parallel>], iteration_bounds = array<i64: 1, 1, 1>, scalar_prefetch = 0 : i64, scratch_operands = 0 : i64, tpu.core_type = #tpu.core_type<tc>, window_params = [{transform_indices = @transform_0, window_bounds = array<i64: 2, 4, 256>}, {transform_indices = @transform_1, window_bounds = array<i64: 2, 256, 4>}]} {
    %c0 = arith.constant 0 : index
    %c0_0 = arith.constant 0 : index
    %c0_1 = arith.constant 0 : index
    %0 = vector.load %arg3[%c0, %c0_0, %c0_1] : memref<2x4x256xf32, #tpu.memory_space<vmem>>, vector<2x4x256xf32>
    %1 = tpu.transpose %0, [0, 2, 1] : vector<2x4x256xf32> -> vector<2x256x4xf32>
    %c0_2 = arith.constant 0 : index
    %c0_3 = arith.constant 0 : index
    %c0_4 = arith.constant 0 : index
    %2 = vector.load %arg4[%c0_2, %c0_3, %c0_4] : memref<2x256x4xf32, #tpu.memory_space<vmem>>, vector<2x256x4xf32>
    tpu.vector_store %arg4[%c0_2, %c0_3, %c0_4], %1 {strides = array<i32>} : memref<2x256x4xf32, #tpu.memory_space<vmem>>, vector<2x256x4xf32>,
    return
  }
  func.func @transform_0(%arg0: i32, %arg1: i32, %arg2: i32) -> (i32, i32, i32) {
    %c0_i32 = arith.constant 0 : i32
    return %arg0, %arg2, %arg1 : i32, i32, i32
  }
  func.func @transform_1(%arg0: i32, %arg1: i32, %arg2: i32) -> (i32, i32, i32) {
    %c0_i32 = arith.constant 0 : i32
    return %arg0, %arg1, %arg2 : i32, i32, i32
  }
}

</mosaic_0001>

<bundles_post_ra>
// kernel: tpu_custom_call.1
= control target key start
LH: loop header
LB: loop body
LE: loop exit
PB: predicated region body
PF: predicated region fallthrough
CT: control target
= control target key end

     0   :  { %6 = vsyncpa [#allocation3], 0  ;;  %s256_s6 = smov [#allocation2]   ;;  %s528_s0 = inlined_call_operand.hbm [shape: f32[2,4,256], index: 0, kind: input, shape index: {}]   ;;  %s529_s1 = inlined_call_operand.vmem [shape: f32[2,256,4], index: 1, kind: output, shape index: {}]  }
   0x1   :  { %s12_s7 = sshll.u32 %s256_s6, 4  ;;  %s13_s7 = int_to_ptr.vmem [resolvable:$true] %s12_s7 }
   0x2   :  { %s242_s8 = scalar_lea.vmem %s13_s7, 256  ;;  %p247_p1 = scmp.lt.s32.totalorder %s13_s7, %s13_s7 }
   0x3   :  { %p243_p0 = scmp.ne.s32.totalorder %s13_s7, %s242_s8  ;;  %p248_p2 = scmp.lt.s32.totalorder %s242_s8, %s242_s8 }
   0x5   :  { %p249_p3 = por %p248_p2, %p247_p1 }
   0x7   :  { %p250_p4 = pnand %p249_p3, %p243_p0 }
   0x9   :  { %253 = shalt.err (!%p250_p4)
}
   0xa   :  { %s257_s9 = smov 128   ;;  %s258_s10 = smov 8  }
   0xb   :  { %18 = dma.hbm_to_vmem [thread:$0]  %s528_s0, 256, %s13_s7, [#allocation3], %s257_s9, %s257_s9, %s258_s10  }
   0xc   :  { %254 = dma.done.wait [#allocation3], 256  }
   0xd   :  { %255 = vsyncadd [#allocation3], 4294967040  ;;  %v23_v0 = vld [vmem:[#allocation2 + $0x8] sm:$0xff]  ;;  %v22_v1 = vld [vmem:[#allocation2] sm:$0xff]  ;;  %vm158_vm0 = vcmask 31744  }
   0xe   :  { %94 = vxpose.xlu1.b32.start.end [1/1] (short) %v23_v0, 128  ;;  %30 = vxpose.xlu0.b32.start.end [1/1] (short) %v22_v1, 128  ;;  %v27_v2 = vcombine.high %v23_v0, %v23_v0  ;;  %v26_v3 = vcombine.high %v22_v1, %v22_v1 }
  0x4b   :  { %126 = vxpose.xlu1.b32.start.end [1/1] (short) %v27_v2, 128  ;;  %62 = vxpose.xlu0.b32.start.end [1/1] (short) %v26_v3, 128 }
  0x8a   :  { %v110_v4 = vpop.trf.xlu1  ;;  %v46_v5 = vpop.trf.xlu0 }
  0x8b   :  { %191 = vst.msk [vmem:[%s529_s1 + $0x100] sm:$0xff] %vm158_vm0, %v110_v4  ;;  %159 = vst.msk [vmem:[%s529_s1] sm:$0xff] %vm158_vm0, %v46_v5 }
  0x8e   :  { %v111_v6 = vpop.trf.xlu1  ;;  %v47_v7 = vpop.trf.xlu0 }
  0x8f   :  { %192 = vst.msk [vmem:[%s529_s1 + $0x108] sm:$0xff] %vm158_vm0, %v111_v6  ;;  %160 = vst.msk [vmem:[%s529_s1 + $0x8] sm:$0xff] %vm158_vm0, %v47_v7 }
  0x92   :  { %v112_v8 = vpop.trf.xlu1  ;;  %v48_v9 = vpop.trf.xlu0 }
  0x93   :  { %193 = vst.msk [vmem:[%s529_s1 + $0x110] sm:$0xff] %vm158_vm0, %v112_v8  ;;  %161 = vst.msk [vmem:[%s529_s1 + $0x10] sm:$0xff] %vm158_vm0, %v48_v9 }
  0x96   :  { %v113_v10 = vpop.trf.xlu1  ;;  %v49_v11 = vpop.trf.xlu0 }
  0x97   :  { %194 = vst.msk [vmem:[%s529_s1 + $0x118] sm:$0xff] %vm158_vm0, %v113_v10  ;;  %162 = vst.msk [vmem:[%s529_s1 + $0x18] sm:$0xff] %vm158_vm0, %v49_v11 }
  0x9a   :  { %v114_v12 = vpop.trf.xlu1  ;;  %v50_v13 = vpop.trf.xlu0 }
  0x9b   :  { %195 = vst.msk [vmem:[%s529_s1 + $0x120] sm:$0xff] %vm158_vm0, %v114_v12  ;;  %163 = vst.msk [vmem:[%s529_s1 + $0x20] sm:$0xff] %vm158_vm0, %v50_v13 }
  0x9e   :  { %v115_v14 = vpop.trf.xlu1  ;;  %v51_v15 = vpop.trf.xlu0 }
  0x9f   :  { %196 = vst.msk [vmem:[%s529_s1 + $0x128] sm:$0xff] %vm158_vm0, %v115_v14  ;;  %164 = vst.msk [vmem:[%s529_s1 + $0x28] sm:$0xff] %vm158_vm0, %v51_v15 }
  0xa2   :  { %v116_v16 = vpop.trf.xlu1  ;;  %v52_v17 = vpop.trf.xlu0 }
  0xa3   :  { %197 = vst.msk [vmem:[%s529_s1 + $0x130] sm:$0xff] %vm158_vm0, %v116_v16  ;;  %165 = vst.msk [vmem:[%s529_s1 + $0x30] sm:$0xff] %vm158_vm0, %v52_v17 }
  0xa6   :  { %v117_v18 = vpop.trf.xlu1  ;;  %v53_v19 = vpop.trf.xlu0 }
  0xa7   :  { %198 = vst.msk [vmem:[%s529_s1 + $0x138] sm:$0xff] %vm158_vm0, %v117_v18  ;;  %166 = vst.msk [vmem:[%s529_s1 + $0x38] sm:$0xff] %vm158_vm0, %v53_v19 }
  0xaa   :  { %v118_v20 = vpop.trf.xlu1  ;;  %v54_v21 = vpop.trf.xlu0 }
  0xab   :  { %199 = vst.msk [vmem:[%s529_s1 + $0x140] sm:$0xff] %vm158_vm0, %v118_v20  ;;  %167 = vst.msk [vmem:[%s529_s1 + $0x40] sm:$0xff] %vm158_vm0, %v54_v21 }
  0xae   :  { %v119_v22 = vpop.trf.xlu1  ;;  %v55_v23 = vpop.trf.xlu0 }
  0xaf   :  { %200 = vst.msk [vmem:[%s529_s1 + $0x148] sm:$0xff] %vm158_vm0, %v119_v22  ;;  %168 = vst.msk [vmem:[%s529_s1 + $0x48] sm:$0xff] %vm158_vm0, %v55_v23 }
  0xb2   :  { %v120_v24 = vpop.trf.xlu1  ;;  %v56_v25 = vpop.trf.xlu0 }
  0xb3   :  { %201 = vst.msk [vmem:[%s529_s1 + $0x150] sm:$0xff] %vm158_vm0, %v120_v24  ;;  %169 = vst.msk [vmem:[%s529_s1 + $0x50] sm:$0xff] %vm158_vm0, %v56_v25 }
  0xb6   :  { %v121_v26 = vpop.trf.xlu1  ;;  %v57_v27 = vpop.trf.xlu0 }
  0xb7   :  { %202 = vst.msk [vmem:[%s529_s1 + $0x158] sm:$0xff] %vm158_vm0, %v121_v26  ;;  %170 = vst.msk [vmem:[%s529_s1 + $0x58] sm:$0xff] %vm158_vm0, %v57_v27 }
  0xba   :  { %v122_v28 = vpop.trf.xlu1  ;;  %v58_v29 = vpop.trf.xlu0 }
  0xbb   :  { %203 = vst.msk [vmem:[%s529_s1 + $0x160] sm:$0xff] %vm158_vm0, %v122_v28  ;;  %171 = vst.msk [vmem:[%s529_s1 + $0x60] sm:$0xff] %vm158_vm0, %v58_v29 }
  0xbe   :  { %v123_v30 = vpop.trf.xlu1  ;;  %v59_v31 = vpop.trf.xlu0 }
  0xbf   :  { %204 = vst.msk [vmem:[%s529_s1 + $0x168] sm:$0xff] %vm158_vm0, %v123_v30  ;;  %172 = vst.msk [vmem:[%s529_s1 + $0x68] sm:$0xff] %vm158_vm0, %v59_v31 }
  0xc2   :  { %v124_v32 = vpop.trf.xlu1  ;;  %v60_v33 = vpop.trf.xlu0 }
  0xc3   :  { %205 = vst.msk [vmem:[%s529_s1 + $0x170] sm:$0xff] %vm158_vm0, %v124_v32  ;;  %173 = vst.msk [vmem:[%s529_s1 + $0x70] sm:$0xff] %vm158_vm0, %v60_v33 }
  0xc6   :  { %v125_v34 = vpop.trf.xlu1  ;;  %v61_v35 = vpop.trf.xlu0 }
  0xc7   :  { %206 = vst.msk [vmem:[%s529_s1 + $0x178] sm:$0xff] %vm158_vm0, %v125_v34  ;;  %174 = vst.msk [vmem:[%s529_s1 + $0x78] sm:$0xff] %vm158_vm0, %v61_v35 }
  0xca   :  { %v142_v36 = vpop.trf.xlu1  ;;  %v78_v37 = vpop.trf.xlu0 }
  0xcb   :  { %207 = vst.msk [vmem:[%s529_s1 + $0x180] sm:$0xff] %vm158_vm0, %v142_v36  ;;  %175 = vst.msk [vmem:[%s529_s1 + $0x80] sm:$0xff] %vm158_vm0, %v78_v37 }
  0xce   :  { %v143_v38 = vpop.trf.xlu1  ;;  %v79_v39 = vpop.trf.xlu0 }
  0xcf   :  { %208 = vst.msk [vmem:[%s529_s1 + $0x188] sm:$0xff] %vm158_vm0, %v143_v38  ;;  %176 = vst.msk [vmem:[%s529_s1 + $0x88] sm:$0xff] %vm158_vm0, %v79_v39 }
  0xd2   :  { %v144_v40 = vpop.trf.xlu1  ;;  %v80_v41 = vpop.trf.xlu0 }
  0xd3   :  { %209 = vst.msk [vmem:[%s529_s1 + $0x190] sm:$0xff] %vm158_vm0, %v144_v40  ;;  %177 = vst.msk [vmem:[%s529_s1 + $0x90] sm:$0xff] %vm158_vm0, %v80_v41 }
  0xd6   :  { %v145_v42 = vpop.trf.xlu1  ;;  %v81_v43 = vpop.trf.xlu0 }
  0xd7   :  { %210 = vst.msk [vmem:[%s529_s1 + $0x198] sm:$0xff] %vm158_vm0, %v145_v42  ;;  %178 = vst.msk [vmem:[%s529_s1 + $0x98] sm:$0xff] %vm158_vm0, %v81_v43 }
  0xda   :  { %v146_v44 = vpop.trf.xlu1  ;;  %v82_v45 = vpop.trf.xlu0 }
  0xdb   :  { %211 = vst.msk [vmem:[%s529_s1 + $0x1a0] sm:$0xff] %vm158_vm0, %v146_v44  ;;  %179 = vst.msk [vmem:[%s529_s1 + $0xa0] sm:$0xff] %vm158_vm0, %v82_v45 }
  0xde   :  { %v147_v46 = vpop.trf.xlu1  ;;  %v83_v47 = vpop.trf.xlu0 }
  0xdf   :  { %212 = vst.msk [vmem:[%s529_s1 + $0x1a8] sm:$0xff] %vm158_vm0, %v147_v46  ;;  %180 = vst.msk [vmem:[%s529_s1 + $0xa8] sm:$0xff] %vm158_vm0, %v83_v47 }
  0xe2   :  { %v148_v48 = vpop.trf.xlu1  ;;  %v84_v49 = vpop.trf.xlu0 }
  0xe3   :  { %213 = vst.msk [vmem:[%s529_s1 + $0x1b0] sm:$0xff] %vm158_vm0, %v148_v48  ;;  %181 = vst.msk [vmem:[%s529_s1 + $0xb0] sm:$0xff] %vm158_vm0, %v84_v49 }
  0xe6   :  { %v149_v50 = vpop.trf.xlu1  ;;  %v85_v51 = vpop.trf.xlu0 }
  0xe7   :  { %214 = vst.msk [vmem:[%s529_s1 + $0x1b8] sm:$0xff] %vm158_vm0, %v149_v50  ;;  %182 = vst.msk [vmem:[%s529_s1 + $0xb8] sm:$0xff] %vm158_vm0, %v85_v51 }
  0xea   :  { %v150_v52 = vpop.trf.xlu1  ;;  %v86_v53 = vpop.trf.xlu0 }
  0xeb   :  { %215 = vst.msk [vmem:[%s529_s1 + $0x1c0] sm:$0xff] %vm158_vm0, %v150_v52  ;;  %183 = vst.msk [vmem:[%s529_s1 + $0xc0] sm:$0xff] %vm158_vm0, %v86_v53 }
  0xee   :  { %v151_v54 = vpop.trf.xlu1  ;;  %v87_v55 = vpop.trf.xlu0 }
  0xef   :  { %216 = vst.msk [vmem:[%s529_s1 + $0x1c8] sm:$0xff] %vm158_vm0, %v151_v54  ;;  %184 = vst.msk [vmem:[%s529_s1 + $0xc8] sm:$0xff] %vm158_vm0, %v87_v55 }
  0xf2   :  { %v152_v56 = vpop.trf.xlu1  ;;  %v88_v57 = vpop.trf.xlu0 }
  0xf3   :  { %217 = vst.msk [vmem:[%s529_s1 + $0x1d0] sm:$0xff] %vm158_vm0, %v152_v56  ;;  %185 = vst.msk [vmem:[%s529_s1 + $0xd0] sm:$0xff] %vm158_vm0, %v88_v57 }
  0xf6   :  { %v153_v58 = vpop.trf.xlu1  ;;  %v89_v59 = vpop.trf.xlu0 }
  0xf7   :  { %218 = vst.msk [vmem:[%s529_s1 + $0x1d8] sm:$0xff] %vm158_vm0, %v153_v58  ;;  %186 = vst.msk [vmem:[%s529_s1 + $0xd8] sm:$0xff] %vm158_vm0, %v89_v59 }
  0xfa   :  { %v154_v60 = vpop.trf.xlu1  ;;  %v90_v61 = vpop.trf.xlu0 }
  0xfb   :  { %219 = vst.msk [vmem:[%s529_s1 + $0x1e0] sm:$0xff] %vm158_vm0, %v154_v60  ;;  %187 = vst.msk [vmem:[%s529_s1 + $0xe0] sm:$0xff] %vm158_vm0, %v90_v61 }
  0xfe   :  { %v155_v62 = vpop.trf.xlu1  ;;  %v91_v63 = vpop.trf.xlu0 }
  0xff   :  { %220 = vst.msk [vmem:[%s529_s1 + $0x1e8] sm:$0xff] %vm158_vm0, %v155_v62  ;;  %188 = vst.msk [vmem:[%s529_s1 + $0xe8] sm:$0xff] %vm158_vm0, %v91_v63 }
 0x102   :  { %v156_v0 = vpop.trf.xlu1  ;;  %v92_v1 = vpop.trf.xlu0 }
 0x103   :  { %221 = vst.msk [vmem:[%s529_s1 + $0x1f0] sm:$0xff] %vm158_vm0, %v156_v0  ;;  %189 = vst.msk [vmem:[%s529_s1 + $0xf0] sm:$0xff] %vm158_vm0, %v92_v1 }
 0x106   :  { %v157_v2 = vpop.trf.xlu1  ;;  %v93_v3 = vpop.trf.xlu0 }
 0x107   :  { %222 = vst.msk [vmem:[%s529_s1 + $0x1f8] sm:$0xff] %vm158_vm0, %v157_v2  ;;  %190 = vst.msk [vmem:[%s529_s1 + $0xf8] sm:$0xff] %vm158_vm0, %v93_v3 }
 0x108   :  { %227 = vsyncpa [#allocation3], 1 }

</bundles_post_ra>
